<compile_context>
chip_gen: v5e
topology: v5e:2x2
jax: 0.10.0
libtpu: 0.0.40
codegen_flags: <defaults>
</compile_context>

<pallas_src>
import numpy as np
import jax
import jax.numpy as jnp
from jax.experimental import pallas as pl
from jax.experimental.pallas import tpu as pltpu


def _round_up(x, m):
    return (x + m - 1) // m * m


def net1_kernel(x_ref, wt_ref, bc_ref, w1_ref, b1_ref, w2_ref, b2_ref, out_ref):
    x = x_ref[...]                                           # (TN, 108) bf16
    # conv + relu + 2x2 maxpool: 4 block-Toeplitz matmuls (one per pool branch),
    # elementwise max across branches, then hoisted bias + ReLU.
    m = jnp.dot(x, wt_ref[0], preferred_element_type=jnp.float32)      # (TN, 288) f32
    for q in range(1, 4):
        m = jnp.maximum(m, jnp.dot(x, wt_ref[q], preferred_element_type=jnp.float32))
    pooled = jnp.maximum(m + bc_ref[...], 0.0)               # relu(maxpool(conv)+b)
    # dense1 (K=288) + ReLU
    h = jnp.dot(pooled.astype(jnp.bfloat16), w1_ref[...],
                preferred_element_type=jnp.float32) + b1_ref[...]
    h = jnp.maximum(h, 0.0)
    # dense2 (K=128)
    out_ref[...] = jnp.dot(h.astype(jnp.bfloat16), w2_ref[...],
                           preferred_element_type=jnp.float32) + b2_ref[...]


def _build_toeplitz(conv_w):
    """conv_w (co=32, ci=3, kh=3, kw=3) -> (4, 108, 288) block-Toeplitz weights.

    Branch q = dh*2+dw selects conv output position (oh,ow) = (2*ph+dh, 2*pw+dw).
    Row index  = ci*36 + ih*6 + iw   (PyTorch NCHW flatten of the raw input)
    Col index  = co*9  + ph*3 + pw   (PyTorch flatten order of the pooled map)
    """
    q = np.arange(4)
    Q, IH, IW, PH, PW = np.meshgrid(q, np.arange(6), np.arange(6),
                                    np.arange(3), np.arange(3), indexing="ij")
    KH = IH - (2 * PH + Q // 2) + 1            # kernel tap hit by input row ih
    KW = IW - (2 * PW + Q % 2) + 1
    mask = ((KH >= 0) & (KH < 3) & (KW >= 0) & (KW < 3)).astype(np.float32)
    g = conv_w[:, :, np.clip(KH, 0, 2), np.clip(KW, 0, 2)] * mask   # (32,3,4,6,6,3,3)
    g = jnp.transpose(g, (2, 1, 3, 4, 0, 5, 6))                     # (q,ci,ih,iw,co,ph,pw)
    return g.reshape(4, 108, 288)


def net1_forward(x, params, tile_n=1024):
    conv_w, conv_b, d1_w, d1_b, d2_w, d2_b = params
    N = x.shape[0]
    tile_n = min(tile_n, _round_up(max(N, 1), 8))
    n_pad = _round_up(N, tile_n)

    # --- glue: flatten raw input (no im2col / pad expansion hits HBM), bf16 DMA ---
    x_flat = x.reshape(N, 108).astype(jnp.bfloat16)
    if n_pad != N:
        x_flat = jnp.pad(x_flat, ((0, n_pad - N), (0, 0)))

    # --- glue: weight re-layouts (pure permutations of the canonical params) ---
    wt = _build_toeplitz(conv_w).astype(jnp.bfloat16)        # (4, 108, 288)
    bc = jnp.repeat(conv_b, 9).reshape(1, 288).astype(jnp.float32)
    w1 = d1_w.T.astype(jnp.bfloat16)                         # (288, 128)
    b1 = d1_b.reshape(1, 128).astype(jnp.float32)
    w2 = d2_w.T.astype(jnp.bfloat16)                         # (128, 10)
    b2 = d2_b.reshape(1, 10).astype(jnp.float32)

    grid = (n_pad // tile_n,)
    flops = 2 * n_pad * (4 * 108 * 288 + 288 * 128 + 128 * 10)
    bytes_accessed = (n_pad * (108 * 2 + 10 * 4)
                      + (4 * 108 * 288 + 288 * 128 + 128 * 10) * 2
                      + (288 + 128 + 10) * 4)

    out = pl.pallas_call(
        net1_kernel,
        out_shape=jax.ShapeDtypeStruct((n_pad, 10), jnp.float32),
        grid_spec=pltpu.PrefetchScalarGridSpec(
            num_scalar_prefetch=0,
            grid=grid,
            in_specs=[
                pl.BlockSpec((tile_n, 108), lambda i: (i, 0)),     # batch-tiled input
                pl.BlockSpec((4, 108, 288), lambda i: (0, 0, 0)),  # weights: VMEM-resident
                pl.BlockSpec((1, 288), lambda i: (0, 0)),
                pl.BlockSpec((288, 128), lambda i: (0, 0)),
                pl.BlockSpec((1, 128), lambda i: (0, 0)),
                pl.BlockSpec((128, 10), lambda i: (0, 0)),
                pl.BlockSpec((1, 10), lambda i: (0, 0)),
            ],
            out_specs=pl.BlockSpec((tile_n, 10), lambda i: (i, 0)),
        ),
        compiler_params=pltpu.CompilerParams(
            dimension_semantics=("parallel",),
        ),
        cost_estimate=pl.CostEstimate(
            flops=flops, bytes_accessed=bytes_accessed, transcendentals=0),
    )(x_flat, wt, bc, w1, b1, w2, b2)
    return out[:N]


def ref_forward(x, params):
    """Pure-JAX f32 reference mirroring the PyTorch forward (correctness check)."""
    conv_w, conv_b, d1_w, d1_b, d2_w, d2_b = params
    y = jax.lax.conv_general_dilated(
        x, conv_w, window_strides=(1, 1), padding=((1, 1), (1, 1)),
        dimension_numbers=("NCHW", "OIHW", "NCHW"))
    y = jnp.maximum(y + conv_b[None, :, None, None], 0.0)
    y = jax.lax.reduce_window(y, -jnp.inf, jax.lax.max, (1, 1, 2, 2), (1, 1, 2, 2), "VALID")
    y = y.reshape(y.shape[0], -1)
    y = jnp.maximum(y @ d1_w.T + d1_b, 0.0)
    return y @ d2_w.T + d2_b


def init_params(key):
    ks = jax.random.split(key, 6)
    cb = 1.0 / jnp.sqrt(3.0 * 9.0)
    conv_w = jax.random.uniform(ks[0], (32, 3, 3, 3), jnp.float32, -cb, cb)
    conv_b = jax.random.uniform(ks[1], (32,), jnp.float32, -cb, cb)
    db1 = 1.0 / jnp.sqrt(288.0)
    d1_w = jax.random.uniform(ks[2], (128, 288), jnp.float32, -db1, db1)
    d1_b = jax.random.uniform(ks[3], (128,), jnp.float32, -db1, db1)
    db2 = 1.0 / jnp.sqrt(128.0)
    d2_w = jax.random.uniform(ks[4], (10, 128), jnp.float32, -db2, db2)
    d2_b = jax.random.uniform(ks[5], (10,), jnp.float32, -db2, db2)
    return conv_w, conv_b, d1_w, d1_b, d2_w, d2_b


if __name__ == "__main__":
    key = jax.random.PRNGKey(0)
    k_x, k_p = jax.random.split(key)
    params = init_params(k_p)
    x = jax.random.normal(k_x, (2, 3, 6, 6), jnp.float32)   # NCHW, 6x6 => 32*3*3 after pool

    out = jax.jit(net1_forward)(x, params)
    out = jax.block_until_ready(out)

    ref = ref_forward(x, params)
    assert out.shape == (2, 10)
    # bf16 operands (f32 accumulation) => loosened tolerance vs the f32 reference.
    assert jnp.allclose(out, ref, rtol=2e-2, atol=2e-2), (out, ref)
    print("KERNEL_OK")
</pallas_src>

<mosaic_0001>
module attributes {stable_mosaic.version = 11 : i64} {
  func.func @net1_kernel(%arg0: i32, %arg1: memref<8x108xbf16, #tpu.memory_space<vmem>>, %arg2: memref<4x108x288xbf16, #tpu.memory_space<vmem>>, %arg3: memref<1x288xf32, #tpu.memory_space<vmem>>, %arg4: memref<288x128xbf16, #tpu.memory_space<vmem>>, %arg5: memref<1x128xf32, #tpu.memory_space<vmem>>, %arg6: memref<128x10xbf16, #tpu.memory_space<vmem>>, %arg7: memref<1x10xf32, #tpu.memory_space<vmem>>, %arg8: memref<8x10xf32, #tpu.memory_space<vmem>>) attributes {dimension_semantics = [#tpu.dimension_semantics<parallel>], iteration_bounds = array<i64: 1>, scalar_prefetch = 0 : i64, scratch_operands = 0 : i64, tpu.core_type = #tpu.core_type<tc>, window_params = [{transform_indices = @transform_0, window_bounds = array<i64: 8, 108>}, {pipeline_mode = #tpu.pipeline_mode<synchronous>, transform_indices = @transform_1, window_bounds = array<i64: 4, 108, 288>}, {pipeline_mode = #tpu.pipeline_mode<synchronous>, transform_indices = @transform_2, window_bounds = array<i64: 1, 288>}, {pipeline_mode = #tpu.pipeline_mode<synchronous>, transform_indices = @transform_3, window_bounds = array<i64: 288, 128>}, {pipeline_mode = #tpu.pipeline_mode<synchronous>, transform_indices = @transform_4, window_bounds = array<i64: 1, 128>}, {pipeline_mode = #tpu.pipeline_mode<synchronous>, transform_indices = @transform_5, window_bounds = array<i64: 128, 10>}, {pipeline_mode = #tpu.pipeline_mode<synchronous>, transform_indices = @transform_6, window_bounds = array<i64: 1, 10>}, {transform_indices = @transform_7, window_bounds = array<i64: 8, 10>}]} {
    %c0 = arith.constant 0 : index
    %c0_0 = arith.constant 0 : index
    %0 = vector.load %arg1[%c0, %c0_0] : memref<8x108xbf16, #tpu.memory_space<vmem>>, vector<8x108xbf16>
    %c0_1 = arith.constant 0 : index
    %c0_2 = arith.constant 0 : index
    %c0_3 = arith.constant 0 : index
    %1 = vector.load %arg2[%c0_1, %c0_2, %c0_3] : memref<4x108x288xbf16, #tpu.memory_space<vmem>>, vector<1x108x288xbf16>
    %2 = vector.shape_cast %1 : vector<1x108x288xbf16> to vector<108x288xbf16>
    %cst = arith.constant dense<0.000000e+00> : vector<8x288xf32>
    %3 = tpu.matmul %0, %2, %cst {dimension_numbers = #tpu.dot_dimension_numbers<[1], [0], [0], [1], [0, 0, 1, 1], [], []>} : vector<8x108xbf16>, vector<108x288xbf16>, vector<8x288xf32> -> vector<8x288xf32>
    %c1 = arith.constant 1 : index
    %c0_4 = arith.constant 0 : index
    %c0_5 = arith.constant 0 : index
    %4 = vector.load %arg2[%c1, %c0_4, %c0_5] : memref<4x108x288xbf16, #tpu.memory_space<vmem>>, vector<1x108x288xbf16>
    %5 = vector.shape_cast %4 : vector<1x108x288xbf16> to vector<108x288xbf16>
    %cst_6 = arith.constant dense<0.000000e+00> : vector<8x288xf32>
    %6 = tpu.matmul %0, %5, %cst_6 {dimension_numbers = #tpu.dot_dimension_numbers<[1], [0], [0], [1], [0, 0, 1, 1], [], []>} : vector<8x108xbf16>, vector<108x288xbf16>, vector<8x288xf32> -> vector<8x288xf32>
    %7 = arith.maximumf %3, %6 : vector<8x288xf32>
    %c2 = arith.constant 2 : index
    %c0_7 = arith.constant 0 : index
    %c0_8 = arith.constant 0 : index
    %8 = vector.load %arg2[%c2, %c0_7, %c0_8] : memref<4x108x288xbf16, #tpu.memory_space<vmem>>, vector<1x108x288xbf16>
    %9 = vector.shape_cast %8 : vector<1x108x288xbf16> to vector<108x288xbf16>
    %cst_9 = arith.constant dense<0.000000e+00> : vector<8x288xf32>
    %10 = tpu.matmul %0, %9, %cst_9 {dimension_numbers = #tpu.dot_dimension_numbers<[1], [0], [0], [1], [0, 0, 1, 1], [], []>} : vector<8x108xbf16>, vector<108x288xbf16>, vector<8x288xf32> -> vector<8x288xf32>
    %11 = arith.maximumf %7, %10 : vector<8x288xf32>
    %c3 = arith.constant 3 : index
    %c0_10 = arith.constant 0 : index
    %c0_11 = arith.constant 0 : index
    %12 = vector.load %arg2[%c3, %c0_10, %c0_11] : memref<4x108x288xbf16, #tpu.memory_space<vmem>>, vector<1x108x288xbf16>
    %13 = vector.shape_cast %12 : vector<1x108x288xbf16> to vector<108x288xbf16>
    %cst_12 = arith.constant dense<0.000000e+00> : vector<8x288xf32>
    %14 = tpu.matmul %0, %13, %cst_12 {dimension_numbers = #tpu.dot_dimension_numbers<[1], [0], [0], [1], [0, 0, 1, 1], [], []>} : vector<8x108xbf16>, vector<108x288xbf16>, vector<8x288xf32> -> vector<8x288xf32>
    %15 = arith.maximumf %11, %14 : vector<8x288xf32>
    %c0_13 = arith.constant 0 : index
    %c0_14 = arith.constant 0 : index
    %16 = vector.load %arg3[%c0_13, %c0_14] : memref<1x288xf32, #tpu.memory_space<vmem>>, vector<1x288xf32>
    %17 = vector.broadcast %16 : vector<1x288xf32> to vector<8x288xf32>
    %18 = arith.addf %15, %17 : vector<8x288xf32>
    %cst_15 = arith.constant 0.000000e+00 : f32
    %19 = vector.broadcast %cst_15 : f32 to vector<8x288xf32>
    %20 = arith.maximumf %18, %19 : vector<8x288xf32>
    %21 = arith.truncf %20 : vector<8x288xf32> to vector<8x288xbf16>
    %c0_16 = arith.constant 0 : index
    %c0_17 = arith.constant 0 : index
    %22 = vector.load %arg4[%c0_16, %c0_17] : memref<288x128xbf16, #tpu.memory_space<vmem>>, vector<288x128xbf16>
    %cst_18 = arith.constant dense<0.000000e+00> : vector<8x128xf32>
    %23 = tpu.matmul %21, %22, %cst_18 {dimension_numbers = #tpu.dot_dimension_numbers<[1], [0], [0], [1], [0, 0, 1, 1], [], []>} : vector<8x288xbf16>, vector<288x128xbf16>, vector<8x128xf32> -> vector<8x128xf32>
    %c0_19 = arith.constant 0 : index
    %c0_20 = arith.constant 0 : index
    %24 = vector.load %arg5[%c0_19, %c0_20] : memref<1x128xf32, #tpu.memory_space<vmem>>, vector<1x128xf32>
    %25 = vector.broadcast %24 : vector<1x128xf32> to vector<8x128xf32>
    %26 = arith.addf %23, %25 : vector<8x128xf32>
    %cst_21 = arith.constant 0.000000e+00 : f32
    %27 = vector.broadcast %cst_21 : f32 to vector<8x128xf32>
    %28 = arith.maximumf %26, %27 : vector<8x128xf32>
    %29 = arith.truncf %28 : vector<8x128xf32> to vector<8x128xbf16>
    %c0_22 = arith.constant 0 : index
    %c0_23 = arith.constant 0 : index
    %30 = vector.load %arg6[%c0_22, %c0_23] : memref<128x10xbf16, #tpu.memory_space<vmem>>, vector<128x10xbf16>
    %cst_24 = arith.constant dense<0.000000e+00> : vector<8x10xf32>
    %31 = tpu.matmul %29, %30, %cst_24 {dimension_numbers = #tpu.dot_dimension_numbers<[1], [0], [0], [1], [0, 0, 1, 1], [], []>} : vector<8x128xbf16>, vector<128x10xbf16>, vector<8x10xf32> -> vector<8x10xf32>
    %c0_25 = arith.constant 0 : index
    %c0_26 = arith.constant 0 : index
    %32 = vector.load %arg7[%c0_25, %c0_26] : memref<1x10xf32, #tpu.memory_space<vmem>>, vector<1x10xf32>
    %33 = vector.broadcast %32 : vector<1x10xf32> to vector<8x10xf32>
    %34 = arith.addf %31, %33 : vector<8x10xf32>
    %c0_27 = arith.constant 0 : index
    %c0_28 = arith.constant 0 : index
    %35 = vector.load %arg8[%c0_27, %c0_28] : memref<8x10xf32, #tpu.memory_space<vmem>>, vector<8x10xf32>
    tpu.vector_store %arg8[%c0_27, %c0_28], %34 {strides = array<i32>} : memref<8x10xf32, #tpu.memory_space<vmem>>, vector<8x10xf32>,
    return
  }
  func.func @transform_0(%arg0: i32) -> (i32, i32) {
    %c0_i32 = arith.constant 0 : i32
    %c0_i32_0 = arith.constant 0 : i32
    return %arg0, %c0_i32 : i32, i32
  }
  func.func @transform_1(%arg0: i32) -> (i32, i32, i32) {
    %c0_i32 = arith.constant 0 : i32
    %c0_i32_0 = arith.constant 0 : i32
    %c0_i32_1 = arith.constant 0 : i32
    %c0_i32_2 = arith.constant 0 : i32
    return %c0_i32, %c0_i32_0, %c0_i32_1 : i32, i32, i32
  }
  func.func @transform_2(%arg0: i32) -> (i32, i32) {
    %c0_i32 = arith.constant 0 : i32
    %c0_i32_0 = arith.constant 0 : i32
    %c0_i32_1 = arith.constant 0 : i32
    return %c0_i32, %c0_i32_0 : i32, i32
  }
  func.func @transform_3(%arg0: i32) -> (i32, i32) {
    %c0_i32 = arith.constant 0 : i32
    %c0_i32_0 = arith.constant 0 : i32
    %c0_i32_1 = arith.constant 0 : i32
    return %c0_i32, %c0_i32_0 : i32, i32
  }
  func.func @transform_4(%arg0: i32) -> (i32, i32) {
    %c0_i32 = arith.constant 0 : i32
    %c0_i32_0 = arith.constant 0 : i32
    %c0_i32_1 = arith.constant 0 : i32
    return %c0_i32, %c0_i32_0 : i32, i32
  }
  func.func @transform_5(%arg0: i32) -> (i32, i32) {
    %c0_i32 = arith.constant 0 : i32
    %c0_i32_0 = arith.constant 0 : i32
    %c0_i32_1 = arith.constant 0 : i32
    return %c0_i32, %c0_i32_0 : i32, i32
  }
  func.func @transform_6(%arg0: i32) -> (i32, i32) {
    %c0_i32 = arith.constant 0 : i32
    %c0_i32_0 = arith.constant 0 : i32
    %c0_i32_1 = arith.constant 0 : i32
    return %c0_i32, %c0_i32_0 : i32, i32
  }
  func.func @transform_7(%arg0: i32) -> (i32, i32) {
    %c0_i32 = arith.constant 0 : i32
    %c0_i32_0 = arith.constant 0 : i32
    return %arg0, %c0_i32 : i32, i32
  }
}

</mosaic_0001>

<bundles_post_ra>
// kernel: net1_forward.1
= control target key start
LH: loop header
LB: loop body
LE: loop exit
PB: predicated region body
PF: predicated region fallthrough
CT: control target
= control target key end

     0   :  { %vm169_vm0 = vcmask 1045504   ;;  %vm165_vm1 = vcmask 883712   ;;  %vm950_vm2 = vcmask 261120   ;;  %vm1076_vm3 = vcmask 80896   ;;  %s2412_s1 = inlined_call_operand.vmem [shape: bf16[4,108,288], index: 1, kind: input, shape index: {}]   ;;  %s2413_s0 = inlined_call_operand.vmem [shape: bf16[8,108], index: 0, kind: input, shape index: {}]   ;;  %s2414_s4 = inlined_call_operand.vmem [shape: f32[1,128], index: 4, kind: input, shape index: {}]   ;;  %s2415_s3 = inlined_call_operand.vmem [shape: bf16[288,128], index: 3, kind: input, shape index: {}]   ;;  %s2416_s5 = inlined_call_operand.vmem [shape: bf16[128,10], index: 5, kind: input, shape index: {}]   ;;  %s2417_s2 = inlined_call_operand.vmem [shape: f32[1,288], index: 2, kind: input, shape index: {}]   ;;  %s2418_s6 = inlined_call_operand.vmem [shape: f32[1,10], index: 6, kind: input, shape index: {}]   ;;  %s2419_s7 = inlined_call_operand.vmem [shape: f32[8,10], index: 7, kind: output, shape index: {}]  }
   0x1   :  { %v1156_v0 = vld [vmem:[%s2412_s1 + $0x90] sm:$0xf]  ;;  %v1638_v1 = vld [vmem:[%s2412_s1 + $0x98] sm:$0x30]  ;;  %v1637_v2 = vld [vmem:[%s2412_s1 + $0x94] sm:$0xf] }
   0x2   :  { %v1157_v3 = vor.u32 %v1638_v1, %v1156_v0  ;;  %v1158_v4 = vld [vmem:[%s2412_s1 + $0x9c] sm:$0x30]  ;;  %v1164_v5 = vld [vmem:[%s2412_s1 + $0x98] sm:$0xf]  ;;  %v1639_v6 = vld [vmem:[%s2412_s1 + $0xa0] sm:$0x30] }
   0x3   :  { %v1161_v7 = vor.u32 %v1637_v2, %v1158_v4  ;;  %v1165_v8 = vor.u32 %v1639_v6, %v1164_v5  ;;  %v1271_v9 = vld [vmem:[%s2412_s1 + $0x138] sm:$0xf]  ;;  %v1659_v10 = vld [vmem:[%s2412_s1 + $0x140] sm:$0x30]  ;;  %v1634_v15 = vld [vmem:[%s2412_s1 + $0x7c] sm:$0xf] }
   0x4   :  { %v1144_v11 = vld [vmem:[%s2412_s1 + $0x78] sm:$0xf]  ;;  %v171_v12 = vsel %vm169_vm0, %v1157_v3, 0  ;;  %v1272_v13 = vor.u32 %v1659_v10, %v1271_v9  ;;  %v1635_v14 = vld [vmem:[%s2412_s1 + $0x80] sm:$0xf0] }
   0x5   :  { %180 = vmatpush.bf16.msra.mxu0 %v171_v12  ;;  %v174_v16 = vsel %vm169_vm0, %v1161_v7, 0  ;;  %v177_v17 = vsel %vm169_vm0, %v1165_v8, 0  ;;  %v1145_v18 = vor.u32 %v1635_v14, %v1144_v11  ;;  %v1146_v19 = vld [vmem:[%s2412_s1 + $0x84] sm:$0xf0]  ;;  %v1152_v20 = vld [vmem:[%s2412_s1 + $0x80] sm:$0xf] }
   0x6   :  { %193 = vmatpush.bf16.msra.mxu1 %v174_v16  ;;  %206 = vmatpush.bf16.msra.mxu2 %v177_v17  ;;  %v357_v21 = vsel %vm169_vm0, %v1272_v13, 0  ;;  %v1149_v22 = vor.u32 %v1634_v15, %v1146_v19  ;;  %v1636_v23 = vld [vmem:[%s2412_s1 + $0x88] sm:$0xf0]  ;;  %v1259_v24 = vld [vmem:[%s2412_s1 + $0x120] sm:$0xf] }
   0x7   :  { %366 = vmatpush.bf16.msra.mxu3 %v357_v21  ;;  %v1153_v25 = vor.u32 %v1636_v23, %v1152_v20  ;;  %v1656_v26 = vld [vmem:[%s2412_s1 + $0x128] sm:$0xf0]  ;;  %v1132_v27 = vld [vmem:[%s2412_s1 + $0x60] sm:$0xf]  ;;  %v1631_v30 = vld [vmem:[%s2412_s1 + $0x64] sm:$0xf] }
   0x8   :  { %v1632_v28 = vld [vmem:[%s2412_s1 + $0x68] sm:$0xf0]  ;;  %v1260_v29 = vor.u32 %v1656_v26, %v1259_v24  ;;  %v1134_v31 = vld [vmem:[%s2412_s1 + $0x6c] sm:$0xf0]  ;;  %v1140_v32 = vld [vmem:[%s2412_s1 + $0x68] sm:$0xf] }
   0x9   :  { %181 = vmatpush.bf16.msra.mxu0 %v1145_v18  ;;  %v1133_v33 = vor.u32 %v1632_v28, %v1132_v27  ;;  %v1633_v34 = vld [vmem:[%s2412_s1 + $0x70] sm:$0xf0]  ;;  %v1247_v35 = vld [vmem:[%s2412_s1 + $0x108] sm:$0xf]  ;;  %v1137_v37 = vor.u32 %v1631_v30, %v1134_v31  ;;  %v1628_v41 = vld [vmem:[%s2412_s1 + $0x4c] sm:$0xf] }
   0xa   :  { %v1653_v36 = vld [vmem:[%s2412_s1 + $0x110] sm:$0xf0]  ;;  %194 = vmatpush.bf16.msra.mxu1 %v1149_v22  ;;  %207 = vmatpush.bf16.msra.mxu2 %v1153_v25  ;;  %v1141_v38 = vor.u32 %v1633_v34, %v1140_v32  ;;  %v1120_v39 = vld [vmem:[%s2412_s1 + $0x48] sm:$0xf]  ;;  %v1122_v43 = vld [vmem:[%s2412_s1 + $0x54] sm:$0xf0] }
   0xb   :  { %v1629_v40 = vld [vmem:[%s2412_s1 + $0x50] sm:$0xf0]  ;;  %367 = vmatpush.bf16.msra.mxu3 %v1260_v29  ;;  %v1248_v42 = vor.u32 %v1653_v36, %v1247_v35  ;;  %v1128_v44 = vld [vmem:[%s2412_s1 + $0x50] sm:$0xf]  ;;  %v1630_v45 = vld [vmem:[%s2412_s1 + $0x58] sm:$0xf0]  ;;  %v1125_v49 = vor.u32 %v1628_v41, %v1122_v43 }
   0xc   :  { %v1235_v46 = vld [vmem:[%s2412_s1 + $0xf0] sm:$0xf]  ;;  %v1650_v47 = vld [vmem:[%s2412_s1 + $0xf8] sm:$0xf0]  ;;  %v1121_v48 = vor.u32 %v1629_v40, %v1120_v39  ;;  %v1129_v50 = vor.u32 %v1630_v45, %v1128_v44  ;;  %v1625_v53 = vld [vmem:[%s2412_s1 + $0x34] sm:$0xf] }
   0xd   :  { %182 = vmatpush.bf16.msra.mxu0 %v1133_v33  ;;  %v1108_v51 = vld [vmem:[%s2412_s1 + $0x30] sm:$0xf]  ;;  %v1626_v52 = vld [vmem:[%s2412_s1 + $0x38] sm:$0xf0]  ;;  %v1236_v54 = vor.u32 %v1650_v47, %v1235_v46  ;;  %v1110_v55 = vld [vmem:[%s2412_s1 + $0x3c] sm:$0xf0] }
   0xe   :  { %195 = vmatpush.bf16.msra.mxu1 %v1137_v37  ;;  %208 = vmatpush.bf16.msra.mxu2 %v1141_v38  ;;  %v1116_v56 = vld [vmem:[%s2412_s1 + $0x38] sm:$0xf]  ;;  %v1627_v57 = vld [vmem:[%s2412_s1 + $0x40] sm:$0xf0]  ;;  %v1109_v60 = vor.u32 %v1626_v52, %v1108_v51  ;;  %v1113_v63 = vor.u32 %v1625_v53, %v1110_v55  ;;  %v1622_v1 = vld [vmem:[%s2412_s1 + $0x1c] sm:$0xf] }
   0xf   :  { %368 = vmatpush.bf16.msra.mxu3 %v1248_v42  ;;  %v1223_v58 = vld [vmem:[%s2412_s1 + $0xd8] sm:$0xf]  ;;  %v1647_v59 = vld [vmem:[%s2412_s1 + $0xe0] sm:$0xf0]  ;;  %v1117_v0 = vor.u32 %v1627_v57, %v1116_v56  ;;  %v1098_v2 = vld [vmem:[%s2412_s1 + $0x24] sm:$0xf0] }
  0x10   :  { %v1096_v61 = vld [vmem:[%s2412_s1 + $0x18] sm:$0xf]  ;;  %v1623_v62 = vld [vmem:[%s2412_s1 + $0x20] sm:$0xf0]  ;;  %v1104_v3 = vld [vmem:[%s2412_s1 + $0x20] sm:$0xf]  ;;  %v1224_v4 = vor.u32 %v1647_v59, %v1223_v58  ;;  %v1101_v17 = vor.u32 %v1622_v1, %v1098_v2 }
  0x11   :  { %183 = vmatpush.bf16.msra.mxu0 %v1121_v48  ;;  %v1624_v5 = vld [vmem:[%s2412_s1 + $0x28] sm:$0xf0]  ;;  %v1211_v6 = vld [vmem:[%s2412_s1 + $0xc0] sm:$0xf]  ;;  %v1658_v10 = vld [vmem:[%s2412_s1 + $0x13c] sm:$0xf]  ;;  %v1097_v11 = vor.u32 %v1623_v62, %v1096_v61 }
  0x12   :  { %196 = vmatpush.bf16.msra.mxu1 %v1125_v49  ;;  %209 = vmatpush.bf16.msra.mxu2 %v1129_v50  ;;  %v1644_v7 = vld [vmem:[%s2412_s1 + $0xc8] sm:$0xf0]  ;;  %v1084_v8 = vld [vmem:[%s2412_s1] sm:$0xf]  ;;  %v1619_v12 = vld [vmem:[%s2412_s1 + $0x4] sm:$0xf]  ;;  %v1105_v18 = vor.u32 %v1624_v5, %v1104_v3 }
  0x13   :  { %369 = vmatpush.bf16.msra.mxu3 %v1236_v54  ;;  %v1620_v9 = vld [vmem:[%s2412_s1 + $0x8] sm:$0xf0]  ;;  %v1086_v13 = vld [vmem:[%s2412_s1 + $0xc] sm:$0xf0]  ;;  %v1273_v14 = vld [vmem:[%s2412_s1 + $0x144] sm:$0x30]  ;;  %v1212_v22 = vor.u32 %v1644_v7, %v1211_v6 }
  0x14   :  { %v1279_v15 = vld [vmem:[%s2412_s1 + $0x140] sm:$0xf]  ;;  %v1660_v16 = vld [vmem:[%s2412_s1 + $0x148] sm:$0x30]  ;;  %v1679_v21 = vld [vmem:[%s2412_s1 + $0x1e4] sm:$0xf]  ;;  %v1276_v25 = vor.u32 %v1658_v10, %v1273_v14  ;;  %v1085_v31 = vor.u32 %v1620_v9, %v1084_v8  ;;  %v1089_v33 = vor.u32 %v1619_v12, %v1086_v13 }
  0x15   :  { %184 = vmatpush.bf16.msra.mxu0 %v1109_v60  ;;  %v1386_v19 = vld [vmem:[%s2412_s1 + $0x1e0] sm:$0xf]  ;;  %v1680_v20 = vld [vmem:[%s2412_s1 + $0x1e8] sm:$0x30]  ;;  %v1092_v23 = vld [vmem:[%s2412_s1 + $0x8] sm:$0xf]  ;;  %v1280_v29 = vor.u32 %v1660_v16, %v1279_v15 }
  0x16   :  { %197 = vmatpush.bf16.msra.mxu1 %v1113_v63  ;;  %210 = vmatpush.bf16.msra.mxu2 %v1117_v0  ;;  %v1621_v24 = vld [vmem:[%s2412_s1 + $0x10] sm:$0xf0]  ;;  %v1388_v26 = vld [vmem:[%s2412_s1 + $0x1ec] sm:$0x30]  ;;  %v1199_v27 = vld [vmem:[%s2412_s1 + $0xa8] sm:$0xf]  ;;  %v1387_v30 = vor.u32 %v1680_v20, %v1386_v19 }
  0x17   :  { %370 = vmatpush.bf16.msra.mxu3 %v1224_v4  ;;  %v1641_v28 = vld [vmem:[%s2412_s1 + $0xb0] sm:$0xf0]  ;;  %v1391_v32 = vor.u32 %v1679_v21, %v1388_v26  ;;  %v1093_v34 = vor.u32 %v1621_v24, %v1092_v23  ;;  %v360_v36 = vsel %vm169_vm0, %v1276_v25, 0  ;;  %v1655_v37 = vld [vmem:[%s2412_s1 + $0x124] sm:$0xf]  ;;  %v363_v39 = vsel %vm169_vm0, %v1280_v29, 0 }
  0x18   :  { %v1200_v35 = vor.u32 %v1641_v28, %v1199_v27  ;;  %v1261_v38 = vld [vmem:[%s2412_s1 + $0x12c] sm:$0xf0]  ;;  %v546_v40 = vsel %vm169_vm0, %v1387_v30, 0  ;;  %v1267_v41 = vld [vmem:[%s2412_s1 + $0x128] sm:$0xf] }
  0x19   :  { %185 = vmatpush.bf16.msra.mxu0 %v1097_v11  ;;  %v1657_v42 = vld [vmem:[%s2412_s1 + $0x130] sm:$0xf0]  ;;  %v549_v43 = vsel %vm169_vm0, %v1391_v32, 0  ;;  %v1374_v44 = vld [vmem:[%s2412_s1 + $0x1c8] sm:$0xf]  ;;  %v1264_v49 = vor.u32 %v1655_v37, %v1261_v38 }
  0x1a   :  { %198 = vmatpush.bf16.msra.mxu1 %v1101_v17  ;;  %211 = vmatpush.bf16.msra.mxu2 %v1105_v18  ;;  %v1677_v45 = vld [vmem:[%s2412_s1 + $0x1d0] sm:$0xf0]  ;;  %v1676_v46 = vld [vmem:[%s2412_s1 + $0x1cc] sm:$0xf]  ;;  %v1376_v47 = vld [vmem:[%s2412_s1 + $0x1d4] sm:$0xf0]  ;;  %v1268_v50 = vor.u32 %v1657_v42, %v1267_v41 }
  0x1b   :  { %371 = vmatpush.bf16.msra.mxu3 %v1212_v22  ;;  %v1998_v48 = vld [vmem:[%s2413_s0] sm:$0xf]  ;;  %v1375_v51 = vor.u32 %v1677_v45, %v1374_v44  ;;  %v1652_v52 = vld [vmem:[%s2412_s1 + $0x10c] sm:$0xf]  ;;  %v1249_v53 = vld [vmem:[%s2412_s1 + $0x114] sm:$0xf0]  ;;  %v1379_v55 = vor.u32 %v1676_v46, %v1376_v47 }
  0x1c   :  { %v1255_v54 = vld [vmem:[%s2412_s1 + $0x110] sm:$0xf]  ;;  %v1654_v56 = vld [vmem:[%s2412_s1 + $0x118] sm:$0xf0]  ;;  %v1673_v59 = vld [vmem:[%s2412_s1 + $0x1b4] sm:$0xf]  ;;  %v1252_v61 = vor.u32 %v1652_v52, %v1249_v53 }
  0x1d   :  { %186 = vmatpush.bf16.msra.mxu0 %v1085_v31  ;;  %v1362_v57 = vld [vmem:[%s2412_s1 + $0x1b0] sm:$0xf]  ;;  %v1674_v58 = vld [vmem:[%s2412_s1 + $0x1b8] sm:$0xf0]  ;;  %v1364_v60 = vld [vmem:[%s2412_s1 + $0x1bc] sm:$0xf0]  ;;  %v1256_v62 = vor.u32 %v1654_v56, %v1255_v54 }
  0x1e   :  { %199 = vmatpush.bf16.msra.mxu1 %v1089_v33  ;;  %212 = vmatpush.bf16.msra.mxu2 %v1093_v34  ;;  %v1363_v63 = vor.u32 %v1674_v58, %v1362_v57  ;;  %v1649_v0 = vld [vmem:[%s2412_s1 + $0xf4] sm:$0xf]  ;;  %v1237_v1 = vld [vmem:[%s2412_s1 + $0xfc] sm:$0xf0]  ;;  %v1243_v2 = vld [vmem:[%s2412_s1 + $0xf8] sm:$0xf]  ;;  %v1367_v3 = vor.u32 %v1673_v59, %v1364_v60 }
  0x1f   :  { %372 = vmatpush.bf16.msra.mxu3 %v1200_v35  ;;  %v1651_v4 = vld [vmem:[%s2412_s1 + $0x100] sm:$0xf0]  ;;  %v1350_v5 = vld [vmem:[%s2412_s1 + $0x198] sm:$0xf]  ;;  %v1670_v7 = vld [vmem:[%s2412_s1 + $0x19c] sm:$0xf]  ;;  %v1240_v9 = vor.u32 %v1649_v0, %v1237_v1 }
  0x20   :  { %1166 = vmatmul.msk.bf16.vlgmr.msra.gmra.mxu0 %vm165_vm1, %v1998_v48  ;;  %v1671_v6 = vld [vmem:[%s2412_s1 + $0x1a0] sm:$0xf0]  ;;  %v1352_v8 = vld [vmem:[%s2412_s1 + $0x1a4] sm:$0xf0]  ;;  %v1244_v10 = vor.u32 %v1651_v4, %v1243_v2  ;;  %v1646_v12 = vld [vmem:[%s2412_s1 + $0xdc] sm:$0xf] }
  0x21   :  { %379 = vmatpush.bf16.msrb.mxu0 %v360_v36  ;;  %1168 = vmatmul.msk.bf16.vlgmr.msra.gmra.mxu2 %vm165_vm1, %v1998_v48  ;;  %v1351_v11 = vor.u32 %v1671_v6, %v1350_v5  ;;  %v1225_v13 = vld [vmem:[%s2412_s1 + $0xe4] sm:$0xf0]  ;;  %v1231_v14 = vld [vmem:[%s2412_s1 + $0xe0] sm:$0xf]  ;;  %v1355_v15 = vor.u32 %v1670_v7, %v1352_v8  ;;  %v1648_v16 = vld [vmem:[%s2412_s1 + $0xe8] sm:$0xf0] }
  0x22   :  { %392 = vmatpush.bf16.msrb.mxu1 %v363_v39  ;;  %555 = vmatpush.bf16.msrb.mxu2 %v546_v40  ;;  %v1338_v17 = vld [vmem:[%s2412_s1 + $0x180] sm:$0xf]  ;;  %v1668_v18 = vld [vmem:[%s2412_s1 + $0x188] sm:$0xf0]  ;;  %v1667_v19 = vld [vmem:[%s2412_s1 + $0x184] sm:$0xf]  ;;  %v1228_v21 = vor.u32 %v1646_v12, %v1225_v13  ;;  %v1232_v23 = vor.u32 %v1648_v16, %v1231_v14 }
  0x23   :  { %568 = vmatpush.bf16.msrb.mxu3 %v549_v43  ;;  %1167 = vmatmul.msk.bf16.vlgmr.msra.gmra.mxu1 %vm165_vm1, %v1998_v48  ;;  %v1340_v20 = vld [vmem:[%s2412_s1 + $0x18c] sm:$0xf0]  ;;  %v1643_v22 = vld [vmem:[%s2412_s1 + $0xc4] sm:$0xf]  ;;  %v1339_v24 = vor.u32 %v1668_v18, %v1338_v17  ;;  %v1219_v26 = vld [vmem:[%s2412_s1 + $0xc8] sm:$0xf] }
  0x24   :  { %1281 = vmatmul.msk.bf16.vlgmr.msra.gmra.mxu3 %vm165_vm1, %v1998_v48  ;;  %v1213_v25 = vld [vmem:[%s2412_s1 + $0xcc] sm:$0xf0]  ;;  %v1645_v27 = vld [vmem:[%s2412_s1 + $0xd0] sm:$0xf0]  ;;  %v1343_v28 = vor.u32 %v1667_v19, %v1340_v20  ;;  %v1326_v29 = vld [vmem:[%s2412_s1 + $0x168] sm:$0xf] }
  0x25   :  { %380 = vmatpush.bf16.msrb.mxu0 %v1264_v49  ;;  %v1665_v30 = vld [vmem:[%s2412_s1 + $0x170] sm:$0xf0]  ;;  %v1664_v31 = vld [vmem:[%s2412_s1 + $0x16c] sm:$0xf]  ;;  %v1328_v32 = vld [vmem:[%s2412_s1 + $0x174] sm:$0xf0]  ;;  %v1216_v35 = vor.u32 %v1643_v22, %v1213_v25  ;;  %v1220_v42 = vor.u32 %v1645_v27, %v1219_v26 }
  0x26   :  { %393 = vmatpush.bf16.msrb.mxu1 %v1268_v50  ;;  %556 = vmatpush.bf16.msrb.mxu2 %v1375_v51  ;;  %v1640_v33 = vld [vmem:[%s2412_s1 + $0xac] sm:$0xf]  ;;  %v1201_v34 = vld [vmem:[%s2412_s1 + $0xb4] sm:$0xf0]  ;;  %v1207_v36 = vld [vmem:[%s2412_s1 + $0xb0] sm:$0xf]  ;;  %v1327_v43 = vor.u32 %v1665_v30, %v1326_v29  ;;  %v1331_v47 = vor.u32 %v1664_v31, %v1328_v32 }
  0x27   :  { %569 = vmatpush.bf16.msrb.mxu3 %v1379_v55  ;;  %v1642_v37 = vld [vmem:[%s2412_s1 + $0xb8] sm:$0xf0]  ;;  %v1314_v38 = vld [vmem:[%s2412_s1 + $0x150] sm:$0xf]  ;;  %v1394_v39 = vld [vmem:[%s2412_s1 + $0x1e8] sm:$0xf]  ;;  %v1204_v55 = vor.u32 %v1640_v33, %v1201_v34 }
  0x28   :  { %v1681_v40 = vld [vmem:[%s2412_s1 + $0x1f0] sm:$0x30]  ;;  %v1501_v41 = vld [vmem:[%s2412_s1 + $0x288] sm:$0xf]  ;;  %v1700_v45 = vld [vmem:[%s2412_s1 + $0x28c] sm:$0xf]  ;;  %v1208_v58 = vor.u32 %v1642_v37, %v1207_v36 }
  0x29   :  { %381 = vmatpush.bf16.msrb.mxu0 %v1252_v61  ;;  %v1701_v44 = vld [vmem:[%s2412_s1 + $0x290] sm:$0x30]  ;;  %v1503_v46 = vld [vmem:[%s2412_s1 + $0x294] sm:$0x30]  ;;  %v1662_v49 = vld [vmem:[%s2412_s1 + $0x158] sm:$0xf0]  ;;  %v1395_v54 = vor.u32 %v1681_v40, %v1394_v39 }
  0x2a   :  { %394 = vmatpush.bf16.msrb.mxu1 %v1256_v62  ;;  %557 = vmatpush.bf16.msrb.mxu2 %v1363_v63  ;;  %v1509_v50 = vld [vmem:[%s2412_s1 + $0x290] sm:$0xf]  ;;  %v1702_v51 = vld [vmem:[%s2412_s1 + $0x298] sm:$0x30]  ;;  %v1661_v52 = vld [vmem:[%s2412_s1 + $0x154] sm:$0xf]  ;;  %v1502_v56 = vor.u32 %v1701_v44, %v1501_v41  ;;  %v1506_v57 = vor.u32 %v1700_v45, %v1503_v46  ;;  %v1315_v59 = vor.u32 %v1662_v49, %v1314_v38 }
  0x2b   :  { %570 = vmatpush.bf16.msrb.mxu3 %v1367_v3  ;;  %v1316_v53 = vld [vmem:[%s2412_s1 + $0x15c] sm:$0xf0]  ;;  %v1510_v60 = vor.u32 %v1702_v51, %v1509_v50  ;;  %v1382_v62 = vld [vmem:[%s2412_s1 + $0x1d0] sm:$0xf]  ;;  %v1678_v63 = vld [vmem:[%s2412_s1 + $0x1d8] sm:$0xf0] }
  0x2c   :  { %v1319_v61 = vor.u32 %v1661_v52, %v1316_v53  ;;  %v552_v0 = vsel %vm169_vm0, %v1395_v54, 0  ;;  %v1489_v1 = vld [vmem:[%s2412_s1 + $0x270] sm:$0xf]  ;;  %v1698_v2 = vld [vmem:[%s2412_s1 + $0x278] sm:$0xf0]  ;;  %v735_v3 = vsel %vm169_vm0, %v1502_v56, 0 }
  0x2d   :  { %382 = vmatpush.bf16.msrb.mxu0 %v1240_v9  ;;  %v738_v4 = vsel %vm169_vm0, %v1506_v57, 0  ;;  %v1697_v5 = vld [vmem:[%s2412_s1 + $0x274] sm:$0xf]  ;;  %v1491_v6 = vld [vmem:[%s2412_s1 + $0x27c] sm:$0xf0]  ;;  %v741_v7 = vsel %vm169_vm0, %v1510_v60, 0 }
  0x2e   :  { %395 = vmatpush.bf16.msrb.mxu1 %v1244_v10  ;;  %558 = vmatpush.bf16.msrb.mxu2 %v1351_v11  ;;  %v1497_v8 = vld [vmem:[%s2412_s1 + $0x278] sm:$0xf]  ;;  %v1699_v9 = vld [vmem:[%s2412_s1 + $0x280] sm:$0xf0]  ;;  %v1383_v10 = vor.u32 %v1678_v63, %v1382_v62  ;;  %v1490_v11 = vor.u32 %v1698_v2, %v1489_v1  ;;  %v1494_v12 = vor.u32 %v1697_v5, %v1491_v6  ;;  %v1694_v18 = vld [vmem:[%s2412_s1 + $0x25c] sm:$0xf] }
  0x2f   :  { %571 = vmatpush.bf16.msrb.mxu3 %v1355_v15  ;;  %v1370_v13 = vld [vmem:[%s2412_s1 + $0x1b8] sm:$0xf]  ;;  %v1675_v14 = vld [vmem:[%s2412_s1 + $0x1c0] sm:$0xf0]  ;;  %v1498_v16 = vor.u32 %v1699_v9, %v1497_v8  ;;  %v1479_v19 = vld [vmem:[%s2412_s1 + $0x264] sm:$0xf0] }
  0x30   :  { %v1477_v15 = vld [vmem:[%s2412_s1 + $0x258] sm:$0xf]  ;;  %v1695_v17 = vld [vmem:[%s2412_s1 + $0x260] sm:$0xf0]  ;;  %v1485_v20 = vld [vmem:[%s2412_s1 + $0x260] sm:$0xf]  ;;  %v1371_v22 = vor.u32 %v1675_v14, %v1370_v13 }
  0x31   :  { %383 = vmatpush.bf16.msrb.mxu0 %v1228_v21  ;;  %v1696_v21 = vld [vmem:[%s2412_s1 + $0x268] sm:$0xf0]  ;;  %v1358_v25 = vld [vmem:[%s2412_s1 + $0x1a0] sm:$0xf]  ;;  %v1691_v30 = vld [vmem:[%s2412_s1 + $0x244] sm:$0xf] }
  0x32   :  { %396 = vmatpush.bf16.msrb.mxu1 %v1232_v23  ;;  %559 = vmatpush.bf16.msrb.mxu2 %v1339_v24  ;;  %v1478_v23 = vor.u32 %v1695_v17, %v1477_v15  ;;  %v1482_v24 = vor.u32 %v1694_v18, %v1479_v19  ;;  %v1672_v26 = vld [vmem:[%s2412_s1 + $0x1a8] sm:$0xf0]  ;;  %v1465_v27 = vld [vmem:[%s2412_s1 + $0x240] sm:$0xf]  ;;  %v1467_v31 = vld [vmem:[%s2412_s1 + $0x24c] sm:$0xf0] }
  0x33   :  { %572 = vmatpush.bf16.msrb.mxu3 %v1343_v28  ;;  %v1486_v28 = vor.u32 %v1696_v21, %v1485_v20  ;;  %v1692_v29 = vld [vmem:[%s2412_s1 + $0x248] sm:$0xf0]  ;;  %v1473_v32 = vld [vmem:[%s2412_s1 + $0x248] sm:$0xf]  ;;  %v1693_v33 = vld [vmem:[%s2412_s1 + $0x250] sm:$0xf0]  ;;  %v1359_v34 = vor.u32 %v1672_v26, %v1358_v25  ;;  %v1470_v36 = vor.u32 %v1691_v30, %v1467_v31 }
  0x34   :  { %v1346_v37 = vld [vmem:[%s2412_s1 + $0x188] sm:$0xf]  ;;  %v1669_v38 = vld [vmem:[%s2412_s1 + $0x190] sm:$0xf0]  ;;  %v1474_v40 = vor.u32 %v1693_v33, %v1473_v32  ;;  %v1461_v44 = vld [vmem:[%s2412_s1 + $0x230] sm:$0xf] }
  0x35   :  { %384 = vmatpush.bf16.msrb.mxu0 %v1216_v35  ;;  %v1466_v35 = vor.u32 %v1692_v29, %v1465_v27  ;;  %v1453_v39 = vld [vmem:[%s2412_s1 + $0x228] sm:$0xf]  ;;  %v1689_v41 = vld [vmem:[%s2412_s1 + $0x230] sm:$0xf0]  ;;  %v1690_v45 = vld [vmem:[%s2412_s1 + $0x238] sm:$0xf0]  ;;  %v1347_v46 = vor.u32 %v1669_v38, %v1346_v37 }
  0x36   :  { %397 = vmatpush.bf16.msrb.mxu1 %v1220_v42  ;;  %560 = vmatpush.bf16.msrb.mxu2 %v1327_v43  ;;  %v1688_v42 = vld [vmem:[%s2412_s1 + $0x22c] sm:$0xf]  ;;  %v1455_v43 = vld [vmem:[%s2412_s1 + $0x234] sm:$0xf0]  ;;  %v1334_v50 = vld [vmem:[%s2412_s1 + $0x170] sm:$0xf]  ;;  %v1462_v53 = vor.u32 %v1690_v45, %v1461_v44 }
  0x37   :  { %573 = vmatpush.bf16.msrb.mxu3 %v1331_v47  ;;  %v1454_v47 = vor.u32 %v1689_v41, %v1453_v39  ;;  %v1458_v49 = vor.u32 %v1688_v42, %v1455_v43  ;;  %v1666_v51 = vld [vmem:[%s2412_s1 + $0x178] sm:$0xf0]  ;;  %v1441_v52 = vld [vmem:[%s2412_s1 + $0x210] sm:$0xf]  ;;  %v1443_v56 = vld [vmem:[%s2412_s1 + $0x21c] sm:$0xf0] }
  0x38   :  { %v1686_v54 = vld [vmem:[%s2412_s1 + $0x218] sm:$0xf0]  ;;  %v1449_v57 = vld [vmem:[%s2412_s1 + $0x218] sm:$0xf]  ;;  %v1663_v63 = vld [vmem:[%s2412_s1 + $0x160] sm:$0xf0] }
  0x39   :  { %385 = vmatpush.bf16.msrb.mxu0 %v1204_v55  ;;  %v1685_v55 = vld [vmem:[%s2412_s1 + $0x214] sm:$0xf]  ;;  %v1442_v60 = vor.u32 %v1686_v54, %v1441_v52  ;;  %v1322_v62 = vld [vmem:[%s2412_s1 + $0x158] sm:$0xf]  ;;  %v1683_v2 = vld [vmem:[%s2412_s1 + $0x200] sm:$0xf0] }
  0x3a   :  { %398 = vmatpush.bf16.msrb.mxu1 %v1208_v58  ;;  %561 = vmatpush.bf16.msrb.mxu2 %v1315_v59  ;;  %v1687_v58 = vld [vmem:[%s2412_s1 + $0x220] sm:$0xf0]  ;;  %v1335_v59 = vor.u32 %v1666_v51, %v1334_v50  ;;  %v1437_v5 = vld [vmem:[%s2412_s1 + $0x200] sm:$0xf]  ;;  %v1684_v6 = vld [vmem:[%s2412_s1 + $0x208] sm:$0xf0] }
  0x3b   :  { %574 = vmatpush.bf16.msrb.mxu3 %v1319_v61  ;;  %v1446_v61 = vor.u32 %v1685_v55, %v1443_v56  ;;  %v1450_v1 = vor.u32 %v1687_v58, %v1449_v57  ;;  %v1709_v13 = vld [vmem:[%s2415_s3 + $0x30] sm:$0xff]  ;;  %v1718_v15 = vld [vmem:[%s2415_s3 + $0x78] sm:$0xff]  ;;  %v1707_v20 = vld [vmem:[%s2415_s3 + $0x20] sm:$0xff] }
  0x3c   :  { %1282 = vmatmul.msk.bf16.vlgmr.msrb.gmra.mxu0 %vm165_vm1, %v1998_v48  ;;  %v1716_v21 = vld [vmem:[%s2415_s3 + $0x68] sm:$0xff]  ;;  %v1715_v25 = vld [vmem:[%s2415_s3 + $0x60] sm:$0xff]  ;;  %v1714_v29 = vld [vmem:[%s2415_s3 + $0x58] sm:$0xff] }
  0x3d   :  { %581 = vmatpush.bf16.msra.mxu0 %v552_v0  ;;  %1396 = vmatmul.msk.bf16.vlgmr.msrb.gmra.mxu2 %vm165_vm1, %v1998_v48  ;;  %v1429_v0 = vld [vmem:[%s2412_s1 + $0x1f8] sm:$0xf]  ;;  %v1704_v30 = vld [vmem:[%s2415_s3 + $0x8] sm:$0xff]  ;;  %v1713_v31 = vld [vmem:[%s2415_s3 + $0x50] sm:$0xff] }
  0x3e   :  { %744 = vmatpush.bf16.msra.mxu1 %v735_v3  ;;  %757 = vmatpush.bf16.msra.mxu2 %v738_v4  ;;  %v1682_v3 = vld [vmem:[%s2412_s1 + $0x1fc] sm:$0xf]  ;;  %v1431_v4 = vld [vmem:[%s2412_s1 + $0x204] sm:$0xf0]  ;;  %v1430_v8 = vor.u32 %v1683_v2, %v1429_v0  ;;  %v1703_v32 = vld [vmem:[%s2415_s3] sm:$0xff] }
  0x3f   :  { %770 = vmatpush.bf16.msra.mxu3 %v741_v7  ;;  %1283 = vmatmul.msk.bf16.vlgmr.msrb.gmra.mxu1 %vm165_vm1, %v1998_v48  ;;  %v1323_v7 = vor.u32 %v1663_v63, %v1322_v62  ;;  %v1434_v9 = vor.u32 %v1682_v3, %v1431_v4  ;;  %v1711_v37 = vld [vmem:[%s2415_s3 + $0x40] sm:$0xff]  ;;  %v1728_v42 = vld [vmem:[%s2416_s5 + $0x38] sm:$0xff]  ;;  %v1727_v43 = vld [vmem:[%s2416_s5 + $0x30] sm:$0xff] }
  0x40   :  { %1397 = vmatmul.msk.bf16.vlgmr.msrb.gmra.mxu3 %vm165_vm1, %v1998_v48 }
  0x41   :  { %582 = vmatpush.bf16.msra.mxu0 %v1383_v10  ;;  %v1438_v10 = vor.u32 %v1684_v6, %v1437_v5 }
  0x42   :  { %745 = vmatpush.bf16.msra.mxu1 %v1490_v11  ;;  %758 = vmatpush.bf16.msra.mxu2 %v1494_v12  ;;  %v1710_v11 = vld [vmem:[%s2415_s3 + $0x38] sm:$0xff] }
  0x43   :  { %771 = vmatpush.bf16.msra.mxu3 %v1498_v16  ;;  %v1717_v16 = vld [vmem:[%s2415_s3 + $0x70] sm:$0xff] }
  0x45   :  { %583 = vmatpush.bf16.msra.mxu0 %v1371_v22 }
  0x46   :  { %746 = vmatpush.bf16.msra.mxu1 %v1478_v23  ;;  %759 = vmatpush.bf16.msra.mxu2 %v1482_v24  ;;  %v1720_v23 = vld [vmem:[%s2415_s3 + $0x88] sm:$0xff]  ;;  %v1706_v24 = vld [vmem:[%s2415_s3 + $0x18] sm:$0xff] }
  0x47   :  { %772 = vmatpush.bf16.msra.mxu3 %v1486_v28  ;;  %v1705_v28 = vld [vmem:[%s2415_s3 + $0x10] sm:$0xff] }
  0x49   :  { %584 = vmatpush.bf16.msra.mxu0 %v1359_v34  ;;  %v1712_v34 = vld [vmem:[%s2415_s3 + $0x48] sm:$0xff] }
  0x4a   :  { %747 = vmatpush.bf16.msra.mxu1 %v1466_v35  ;;  %760 = vmatpush.bf16.msra.mxu2 %v1470_v36  ;;  %v1719_v36 = vld [vmem:[%s2415_s3 + $0x80] sm:$0xff] }
  0x4b   :  { %773 = vmatpush.bf16.msra.mxu3 %v1474_v40 }
  0x4d   :  { %585 = vmatpush.bf16.msra.mxu0 %v1347_v46  ;;  %v1726_v46 = vld [vmem:[%s2416_s5 + $0x28] sm:$0xff] }
  0x4e   :  { %748 = vmatpush.bf16.msra.mxu1 %v1454_v47  ;;  %761 = vmatpush.bf16.msra.mxu2 %v1458_v49  ;;  %v785_v47 = vld [vmem:[%s2417_s2] sm:$0x7] }
  0x4f   :  { %774 = vmatpush.bf16.msra.mxu3 %v1462_v53  ;;  %v787_v52 = vperm.slane %v785_v47, 0  ;;  %v789_v63 = vperm.slane %v785_v47, 2 }
  0x51   :  { %586 = vmatpush.bf16.msra.mxu0 %v1335_v59 }
  0x52   :  { %749 = vmatpush.bf16.msra.mxu1 %v1442_v60  ;;  %762 = vmatpush.bf16.msra.mxu2 %v1446_v61  ;;  %v788_v60 = vperm.slane %v785_v47, 1 }
  0x53   :  { %775 = vmatpush.bf16.msra.mxu3 %v1450_v1 }
  0x55   :  { %587 = vmatpush.bf16.msra.mxu0 %v1323_v7 }
  0x56   :  { %750 = vmatpush.bf16.msra.mxu1 %v1430_v8  ;;  %763 = vmatpush.bf16.msra.mxu2 %v1434_v9 }
  0x57   :  { %776 = vmatpush.bf16.msra.mxu3 %v1438_v10 }
  0x58   :  { %1398 = vmatmul.msk.bf16.vlgmr.msra.gmra.mxu0 %vm165_vm1, %v1998_v48 }
  0x59   :  { %1511 = vmatmul.msk.bf16.vlgmr.msra.gmra.mxu1 %vm165_vm1, %v1998_v48  ;;  %1512 = vmatmul.msk.bf16.vlgmr.msra.gmra.mxu2 %vm165_vm1, %v1998_v48 }
  0x5a   :  { %1513 = vmatmul.msk.bf16.vlgmr.msra.gmra.mxu3 %vm165_vm1, %v1998_v48  ;;  %954 = vmatpush.bf16.msrb.mxu0 %v1710_v11  ;;  %v1708_v48 = vld [vmem:[%s2415_s3 + $0x28] sm:$0xff] }
  0x5b   :  { %967 = vmatpush.bf16.msrb.mxu1 %v1718_v15  ;;  %986 = vmatpush.bf16.msrb.mxu2 %v1720_v23  ;;  %v1724_v15 = vld [vmem:[%s2416_s5 + $0x18] sm:$0xff] }
  0x5c   :  { %1063 = vmatpush.bf16.msrb.mxu3 %v1728_v42 }
  0x5e   :  { %955 = vmatpush.bf16.msrb.mxu0 %v1709_v13 }
  0x5f   :  { %968 = vmatpush.bf16.msrb.mxu1 %v1717_v16  ;;  %987 = vmatpush.bf16.msrb.mxu2 %v1719_v36  ;;  %v1722_v16 = vld [vmem:[%s2416_s5 + $0x8] sm:$0xff] }
  0x60   :  { %1064 = vmatpush.bf16.msrb.mxu3 %v1727_v43 }
  0x62   :  { %956 = vmatpush.bf16.msrb.mxu0 %v1708_v48  ;;  %v1723_v48 = vld [vmem:[%s2416_s5 + $0x10] sm:$0xff] }
  0x63   :  { %969 = vmatpush.bf16.msrb.mxu1 %v1716_v21 }
  0x64   :  { %1065 = vmatpush.bf16.msrb.mxu3 %v1726_v46 }
  0x66   :  { %957 = vmatpush.bf16.msrb.mxu0 %v1707_v20 }
  0x67   :  { %970 = vmatpush.bf16.msrb.mxu1 %v1715_v25 }
  0x6a   :  { %958 = vmatpush.bf16.msrb.mxu0 %v1706_v24 }
  0x6b   :  { %971 = vmatpush.bf16.msrb.mxu1 %v1714_v29 }
  0x6e   :  { %959 = vmatpush.bf16.msrb.mxu0 %v1705_v28 }
  0x6f   :  { %972 = vmatpush.bf16.msrb.mxu1 %v1713_v31 }
  0x72   :  { %960 = vmatpush.bf16.msrb.mxu0 %v1704_v30  ;;  %v1730_v30 = vld [vmem:[%s2418_s6] ss:$0 sm:$0xff] }
  0x73   :  { %973 = vmatpush.bf16.msrb.mxu1 %v1712_v34 }
  0x76   :  { %961 = vmatpush.bf16.msrb.mxu0 %v1703_v32 }
  0x77   :  { %974 = vmatpush.bf16.msrb.mxu1 %v1711_v37 }
  0x9d   :  { %v188_v12 = vpop.f32.mrf.mxu0 }
  0xa0   :  { %v2322_v14 = vpop.f32.mrf.mxu1 }
  0xa4   :  { %v2333_v17 = vpop.f32.mrf.mxu2 }
  0xa5   :  { %v190_v19 = vpop.f32.mrf.mxu0 }
  0xa6   :  { %v1729_v19 = vld [vmem:[%s2414_s4] ss:$0 sm:$0xff] }
  0xa7   :  { %v374_v18 = vpop.f32.mrf.mxu3 }
  0xa8   :  { %v203_v22 = vpop.f32.mrf.mxu1  ;;  %v404_v49 = vmax.f32 %v188_v12, %v374_v18 }
  0xac   :  { %v216_v26 = vpop.f32.mrf.mxu2 }
  0xaf   :  { %v376_v27 = vpop.f32.mrf.mxu3 }
  0xb9   :  { %v387_v33 = vpop.f32.mrf.mxu0 }
  0xba   :  { %v405_v55 = vmax.f32 %v2322_v14, %v387_v33  ;;  %v1725_v14 = vld [vmem:[%s2416_s5 + $0x20] sm:$0xff] }
  0xbb   :  { %1066 = vmatpush.bf16.msrb.mxu3 %v1725_v14 }
  0xbc   :  { %v400_v35 = vpop.f32.mrf.mxu1 }
  0xbd   :  { %v406_v57 = vmax.f32 %v2333_v17, %v400_v35  ;;  %v1721_v17 = vld [vmem:[%s2416_s5] sm:$0xff] }
  0xbf   :  { %1067 = vmatpush.bf16.msrb.mxu3 %v1724_v15 }
  0xc0   :  { %v563_v38 = vpop.f32.mrf.mxu2 }
  0xc1   :  { %v389_v40 = vpop.f32.mrf.mxu0  ;;  %v593_v50 = vmax.f32 %v404_v49, %v563_v38 }
  0xc3   :  { %v576_v39 = vpop.f32.mrf.mxu3  ;;  %1068 = vmatpush.bf16.msrb.mxu3 %v1723_v48 }
  0xc4   :  { %v402_v41 = vpop.f32.mrf.mxu1  ;;  %v594_v58 = vmax.f32 %v405_v55, %v576_v39 }
  0xc7   :  { %1069 = vmatpush.bf16.msrb.mxu3 %v1722_v16 }
  0xc8   :  { %v565_v44 = vpop.f32.mrf.mxu2 }
  0xcb   :  { %v578_v45 = vpop.f32.mrf.mxu3  ;;  %1070 = vmatpush.bf16.msrb.mxu3 %v1721_v17 }
  0xd5   :  { %v589_v51 = vpop.f32.mrf.mxu0 }
  0xd6   :  { %v752_v53 = vpop.f32.mrf.mxu1  ;;  %v595_v61 = vmax.f32 %v406_v57, %v589_v51 }
  0xd7   :  { %v782_v54 = vmax.f32 %v593_v50, %v752_v53 }
  0xd9   :  { %v793_v56 = vadd.f32 %v787_v52, %v782_v54 }
  0xdb   :  { %v796_v59 = vmax.f32 %v793_v56, 0.0 }
  0xdc   :  { %v765_v62 = vpop.f32.mrf.mxu2 }
  0xdd   :  { %v799_v0 = vpack.c.bf16 %v796_v59, %v796_v59  ;;  %v783_v1 = vmax.f32 %v594_v58, %v765_v62  ;;  %v778_v2 = vpop.f32.mrf.mxu3  ;;  %v591_v3 = vpop.f32.mrf.mxu0 }
  0xde   :  { %v784_v4 = vmax.f32 %v595_v61, %v778_v2  ;;  %v754_v5 = vpop.f32.mrf.mxu1 }
  0xdf   :  { %v794_v6 = vadd.f32 %v788_v60, %v783_v1  ;;  %962 = vmatmul.bf16.vlgmr.msrb.gmra.mxu0 %v799_v0 }
  0xe0   :  { %v795_v7 = vadd.f32 %v789_v63, %v784_v4 }
  0xe1   :  { %v797_v8 = vmax.f32 %v794_v6, 0.0 }
  0xe2   :  { %v798_v9 = vmax.f32 %v795_v7, 0.0 }
  0xe3   :  { %v800_v10 = vpack.c.bf16 %v797_v8, %v797_v8 }
  0xe4   :  { %v801_v11 = vpack.c.bf16 %v798_v9, %v798_v9  ;;  %v767_v12 = vpop.f32.mrf.mxu2 }
  0xe5   :  { %v780_v13 = vpop.f32.mrf.mxu3  ;;  %975 = vmatmul.bf16.vlgmr.msrb.gmra.mxu1 %v800_v10 }
  0xe6   :  { %1586 = vmatmul.msk.bf16.vlgmr.msrb.gmra.mxu2 %vm950_vm2, %v801_v11 }
 0x15c   :  { %v963_v18 = vpop.f32.mrf.mxu0 }
 0x15d   :  { %v964_v22 = vadd.f32 %v1729_v19, %v963_v18 }
 0x162   :  { %v976_v20 = vpop.f32.mrf.mxu1 }
 0x163   :  { %v977_v23 = vadd.f32 %v976_v20, %v964_v22 }
 0x164   :  { %v965_v21 = vpop.f32.mrf.mxu0 }
 0x169   :  { %v989_v24 = vpop.f32.mrf.mxu2 }
 0x16a   :  { %v990_v25 = vadd.f32 %v989_v24, %v977_v23  ;;  %v978_v26 = vpop.f32.mrf.mxu1 }
 0x16c   :  { %v993_v27 = vmax.f32 %v990_v25, 0.0 }
 0x16e   :  { %v994_v28 = vpack.c.bf16 %v993_v27, %v993_v27 }
 0x170   :  { %1071 = vmatmul.bf16.vlgmr.msrb.gmra.mxu3 %v994_v28 }
 0x171   :  { %v991_v29 = vpop.f32.mrf.mxu2 }
 0x1f3   :  { %v1072_v31 = vpop.f32.mrf.mxu3 }
 0x1f4   :  { %v1073_v32 = vadd.f32 %v1730_v30, %v1072_v31 }
 0x1f6   :  { %1077 = vst.msk [vmem:[%s2419_s7] sm:$0xff] %vm1076_vm3, %v1073_v32 }
 0x1fb   :  { %v1074_v33 = vpop.f32.mrf.mxu3 }

</bundles_post_ra>
